<compile_context>
chip_gen: v7x
topology: tpu7x:2x2x1
jax: 0.10.0
libtpu: 0.0.40
codegen_flags: <defaults>
</compile_context>

<pallas_src>
import functools

import jax
import jax.numpy as jnp
from jax.experimental import pallas as pl
from jax.experimental.pallas import tpu as pltpu

_SMOOTH = 1e-6
_LANES = 128
# (8192, 128) f32 = 4 MiB / input / pipeline buffer -> 16 MiB of double-buffered
# inputs; per-step DMA = 8 MiB, which amortizes the ~0.35 us step overhead to
# <~10% on v6e and ~12% on v7x while staying well inside the 48 MiB scoped VMEM
# limit below on every generation (v7x physical VMEM is only 64 MiB per TC).
_MAX_BLOCK_ROWS = 8192
_VMEM_LIMIT_BYTES = 48 * 1024 * 1024


def _ce_kernel(yp_ref, yt_ref, out_ref, *, block_rows, valid_rows,
               steps_per_chunk, needs_mask):
    c = pl.program_id(0)  # chunk axis ("parallel"; sharded across TCs where possible)
    i = pl.program_id(1)  # sequential reduction axis

    # Zero the (1, 128) lane-shaped accumulator (the output block itself) at
    # the start of each chunk's reduction.
    @pl.when(i == 0)
    def _():
        out_ref[...] = jnp.zeros_like(out_ref)

    yp = yp_ref[...].astype(jnp.float32)
    yt = yt_ref[...].astype(jnp.float32)
    prod = yt * jnp.log(yp + _SMOOTH)

    if needs_mask:
        blk = c * steps_per_chunk + i            # UNclamped block index
        first_masked = valid_rows // block_rows  # first block touching invalid rows

        # Steady-state fast path: full blocks pay no masking VALU work.
        @pl.when(blk < first_masked)
        def _():
            out_ref[...] += jnp.sum(prod, axis=0, keepdims=True)

        # Ragged last block and clamped overrun blocks: mask the PRODUCT (a
        # select drops any NaN/Inf from log() of unspecified padding data).
        @pl.when(blk >= first_masked)
        def _():
            start_row = blk * block_rows
            row_ids = start_row + jax.lax.broadcasted_iota(
                jnp.int32, (block_rows, _LANES), 0)
            masked = jnp.where(row_ids < valid_rows, prod, 0.0)
            out_ref[...] += jnp.sum(masked, axis=0, keepdims=True)
    else:
        out_ref[...] += jnp.sum(prod, axis=0, keepdims=True)


def _tensorcores_per_chip():
    """Best-effort TC-per-chip detection; either answer is correct, only perf differs."""
    try:
        kind = jax.devices()[0].device_kind.lower()
    except Exception:
        return 1
    return 2 if any(v in kind for v in ("v7", "v5p", "v4")) else 1


def crossentropy_pallas(y_pred, y_true, *, max_block_rows=_MAX_BLOCK_ROWS):
    """-mean(y_true * log(y_pred + 1e-6)), computed in a Pallas TPU kernel."""
    assert y_pred.shape == y_true.shape
    n_elems = y_pred.size

    yp_flat = jnp.ravel(y_pred)
    yt_flat = jnp.ravel(y_true)

    # Pad ONLY when the element count is not lane-divisible (<=127 neutral
    # elements; padded positions use y_pred=1, y_true=0 -> contribute exactly 0).
    # TODO(synk): this pad is still a whole-array HBM copy for non-lane-divisible
    # inputs; a 1-D / element-granular-masked path would remove it.
    lane_pad = (-n_elems) % _LANES
    if lane_pad:
        yp_flat = jnp.pad(yp_flat, (0, lane_pad), constant_values=1.0)
        yt_flat = jnp.pad(yt_flat, (0, lane_pad), constant_values=0.0)

    rows = (n_elems + lane_pad) // _LANES
    yp2d = yp_flat.reshape(rows, _LANES)   # free metadata reshape
    yt2d = yt_flat.reshape(rows, _LANES)

    # Block rows: either the full row count, or a multiple of 8 (8,128 rule).
    if rows > max_block_rows:
        block_rows = max(8, (max_block_rows // 8) * 8)
    else:
        block_rows = rows
    total_blocks = pl.cdiv(rows, block_rows)

    # Only emit the 2-wide parallel chunk axis on multi-TensorCore chips; on
    # single-TC chips it is just a serial loop plus a wasted duplicate block.
    num_chunks = 2 if (_tensorcores_per_chip() >= 2 and total_blocks >= 2) else 1
    steps_per_chunk = pl.cdiv(total_blocks, num_chunks)

    # Static: do the grid / block edges overrun the real data?
    needs_mask = (num_chunks * steps_per_chunk != total_blocks
                  or total_blocks * block_rows != rows)

    def in_map(c, i):
        blk = c * steps_per_chunk + i
        # Clamp over-run blocks of the last chunk; the kernel masks them fully.
        return (jnp.minimum(blk, total_blocks - 1), 0)

    kernel = functools.partial(
        _ce_kernel,
        block_rows=block_rows,
        valid_rows=rows,
        steps_per_chunk=steps_per_chunk,
        needs_mask=needs_mask,
    )

    partials = pl.pallas_call(
        kernel,
        out_shape=jax.ShapeDtypeStruct((1, num_chunks * _LANES), jnp.float32),
        grid_spec=pltpu.PrefetchScalarGridSpec(
            num_scalar_prefetch=0,
            grid=(num_chunks, steps_per_chunk),
            in_specs=[
                pl.BlockSpec((block_rows, _LANES), in_map),
                pl.BlockSpec((block_rows, _LANES), in_map),
            ],
            # Each chunk owns its own lane-dense (1, 128) accumulator slab.
            out_specs=pl.BlockSpec((1, _LANES), lambda c, i: (0, c)),
        ),
        compiler_params=pltpu.CompilerParams(
            dimension_semantics=("parallel", "arbitrary"),
            vmem_limit_bytes=_VMEM_LIMIT_BYTES),
    )(yp2d, yt2d)

    # Single cross-lane/chunk reduce + mean normalization (unpadded count).
    return -jnp.sum(partials) / jnp.float32(n_elems)


def crossentropy_ref(y_pred, y_true):
    return -jnp.mean(y_true * jnp.log(y_pred + _SMOOTH))


def _check(y_pred, y_true, **kwargs):
    loss = crossentropy_pallas(y_pred, y_true, **kwargs)
    loss = jax.block_until_ready(loss)
    ref = crossentropy_ref(y_pred, y_true)
    assert jnp.allclose(loss, ref, rtol=1e-4, atol=1e-6), (loss, ref)


if __name__ == "__main__":
    key = jax.random.PRNGKey(0)
    k1, k2, k3, k4, k5, k6 = jax.random.split(key, 6)

    # 1) Small NCHW-shaped inputs consistent with a segmentation-style loss
    #    (lane-divisible: no padding, no masking path, single block).
    shape = (2, 4, 16, 16)
    y_pred = jax.nn.softmax(jax.random.normal(k1, shape), axis=1)
    y_true = (jax.random.uniform(k2, shape) > 0.5).astype(jnp.float32)
    _check(y_pred, y_true)

    # 2) Odd element count: exercises the (tiny) conditional lane-padding path.
    shape2 = (2, 3, 17, 19)
    y_pred2 = jax.nn.softmax(jax.random.normal(k3, shape2), axis=1)
    y_true2 = (jax.random.uniform(k4, shape2) > 0.5).astype(jnp.float32)
    _check(y_pred2, y_true2)

    # 3) Multi-block grid with ragged last block (+ clamped overrun block on
    #    multi-TC chips): exercises the gated in-kernel masking path
    #    (small block size purely for test coverage).
    shape3 = (3, 5, 72, 66)
    y_pred3 = jax.nn.softmax(jax.random.normal(k5, shape3), axis=1)
    y_true3 = (jax.random.uniform(k6, shape3) > 0.5).astype(jnp.float32)
    _check(y_pred3, y_true3, max_block_rows=64)

    print("KERNEL_OK")
</pallas_src>

<mosaic_0001>
module attributes {stable_mosaic.version = 11 : i64} {
  func.func @_ce_kernel(%arg0: i32, %arg1: i32, %arg2: memref<16x128xf32, #tpu.memory_space<vmem>>, %arg3: memref<16x128xf32, #tpu.memory_space<vmem>>, %arg4: memref<1x128xf32, #tpu.memory_space<vmem>>) attributes {dimension_semantics = [#tpu.dimension_semantics<parallel>, #tpu.dimension_semantics<arbitrary>], iteration_bounds = array<i64: 1, 1>, scalar_prefetch = 0 : i64, scratch_operands = 0 : i64, tpu.core_type = #tpu.core_type<tc>, window_params = [{transform_indices = @transform_0, window_bounds = array<i64: 16, 128>}, {transform_indices = @transform_1, window_bounds = array<i64: 16, 128>}, {transform_indices = @transform_2, window_bounds = array<i64: 1, 128>}]} {
    %c0_i32 = arith.constant 0 : i32
    %0 = arith.cmpi eq, %arg1, %c0_i32 : i32
    %1 = arith.extui %0 : i1 to i32
    %c0_i32_0 = arith.constant 0 : i32
    %2 = arith.cmpi ne, %1, %c0_i32_0 : i32
    scf.if %2 {
      %cst_9 = arith.constant 0.000000e+00 : f32
      %14 = vector.broadcast %cst_9 : f32 to vector<1x128xf32>
      %c0_10 = arith.constant 0 : index
      %c0_11 = arith.constant 0 : index
      %15 = vector.load %arg4[%c0_10, %c0_11] : memref<1x128xf32, #tpu.memory_space<vmem>>, vector<1x128xf32>
      tpu.vector_store %arg4[%c0_10, %c0_11], %14 {strides = array<i32>} : memref<1x128xf32, #tpu.memory_space<vmem>>, vector<1x128xf32>,
    } else {
    }
    %c0 = arith.constant 0 : index
    %c0_1 = arith.constant 0 : index
    %3 = vector.load %arg2[%c0, %c0_1] : memref<16x128xf32, #tpu.memory_space<vmem>>, vector<16x128xf32>
    %c0_2 = arith.constant 0 : index
    %c0_3 = arith.constant 0 : index
    %4 = vector.load %arg3[%c0_2, %c0_3] : memref<16x128xf32, #tpu.memory_space<vmem>>, vector<16x128xf32>
    %cst = arith.constant 9.99999997E-7 : f32
    %5 = vector.broadcast %cst : f32 to vector<16x128xf32>
    %6 = arith.addf %3, %5 : vector<16x128xf32>
    %7 = math.log %6 : vector<16x128xf32>
    %8 = arith.mulf %4, %7 : vector<16x128xf32>
    %c0_4 = arith.constant 0 : index
    %c0_5 = arith.constant 0 : index
    %9 = vector.load %arg4[%c0_4, %c0_5] : memref<1x128xf32, #tpu.memory_space<vmem>>, vector<1x128xf32>
    %cst_6 = arith.constant dense<0.000000e+00> : vector<128xf32>
    %10 = vector.multi_reduction <add>, %8, %cst_6 [0] : vector<16x128xf32> to vector<128xf32>
    %11 = vector.shape_cast %10 : vector<128xf32> to vector<1x128xf32>
    %12 = arith.addf %9, %11 : vector<1x128xf32>
    %c0_7 = arith.constant 0 : index
    %c0_8 = arith.constant 0 : index
    %13 = vector.load %arg4[%c0_7, %c0_8] : memref<1x128xf32, #tpu.memory_space<vmem>>, vector<1x128xf32>
    tpu.vector_store %arg4[%c0_7, %c0_8], %12 {strides = array<i32>} : memref<1x128xf32, #tpu.memory_space<vmem>>, vector<1x128xf32>,
    return
  }
  func.func @transform_0(%arg0: i32, %arg1: i32) -> (i32, i32) {
    %c1_i32 = arith.constant 1 : i32
    %0 = arith.muli %arg0, %c1_i32 : i32
    %1 = arith.addi %0, %arg1 : i32
    %c0_i32 = arith.constant 0 : i32
    %2 = arith.minsi %1, %c0_i32 : i32
    %c0_i32_0 = arith.constant 0 : i32
    %c0_i32_1 = arith.constant 0 : i32
    return %2, %c0_i32_0 : i32, i32
  }
  func.func @transform_1(%arg0: i32, %arg1: i32) -> (i32, i32) {
    %c1_i32 = arith.constant 1 : i32
    %0 = arith.muli %arg0, %c1_i32 : i32
    %1 = arith.addi %0, %arg1 : i32
    %c0_i32 = arith.constant 0 : i32
    %2 = arith.minsi %1, %c0_i32 : i32
    %c0_i32_0 = arith.constant 0 : i32
    %c0_i32_1 = arith.constant 0 : i32
    return %2, %c0_i32_0 : i32, i32
  }
  func.func @transform_2(%arg0: i32, %arg1: i32) -> (i32, i32) {
    %c0_i32 = arith.constant 0 : i32
    %c0_i32_0 = arith.constant 0 : i32
    return %c0_i32, %arg0 : i32, i32
  }
}

</mosaic_0001>

<bundles_post_ra>
// kernel: tpu_custom_call.1
= control target key start
LH: loop header
LB: loop body
LE: loop exit
PB: predicated region body
PF: predicated region fallthrough
CT: control target
= control target key end

     0   :  { %7 = vsyncpa [#allocation3], 0  ;;  %s246_s0 = inlined_call_operand.hbm [shape: f32[16,128], index: 0, kind: input, shape index: {}]   ;;  %s247_s1 = inlined_call_operand.hbm [shape: f32[16,128], index: 1, kind: input, shape index: {}]   ;;  %s248_s2 = inlined_call_operand.hbm [shape: f32[1,128], index: 2, kind: output, shape index: {}]  }
   0x1   :  { %8 = vsyncpa [#allocation6], 0 }
   0x2   :  { %9 = vsyncpa [#allocation4], 0  ;;  %s189_s9 = smov [#allocation2]   ;;  %s117_s13 = scalar_lea.hbm %s246_s0, 256 }
   0x3   :  { %s21_s10 = sshll.u32 %s189_s9, 4  ;;  %p118_p0 = scmp.ne.s32.totalorder %s246_s0, %s117_s13  ;;  %s22_s10 = int_to_ptr.vmem [resolvable:$true] %s21_s10 }
   0x4   :  { %p121_p1 = scmp.lt.u32.totalorder %s117_s13, %s246_s0 }
   0x6   :  { %p123_p2 = pnand %p121_p1, %p118_p0 }
   0x8   :  { %126 = shalt.err (!%p123_p2)
}
   0x9   :  { %s127_s18 = scalar_lea.vmem %s22_s10, 256  ;;  %p132_p4 = scmp.lt.s32.totalorder %s22_s10, %s22_s10 }
   0xa   :  { %p128_p3 = scmp.ne.s32.totalorder %s22_s10, %s127_s18  ;;  %p133_p5 = scmp.lt.s32.totalorder %s127_s18, %s127_s18 }
   0xc   :  { %p134_p6 = por %p133_p5, %p132_p4 }
   0xe   :  { %p135_p7 = pnand %p134_p6, %p128_p3 }
  0x10   :  { %138 = shalt.err (!%p135_p7)
}
  0x11   :  { %s190_s19 = smov 128   ;;  %s191_s20 = smov 8  }
  0x12   :  { %27 = dma.hbm_to_vmem [thread:$0]  %s246_s0, 256, %s22_s10, [#allocation3], %s190_s19, %s190_s19, %s191_s20  }
  0x13   :  { %s192_s23 = smov [#allocation5]   ;;  %s139_s27 = scalar_lea.hbm %s247_s1, 256 }
  0x14   :  { %s39_s24 = sshll.u32 %s192_s23, 4  ;;  %p140_p8 = scmp.ne.s32.totalorder %s247_s1, %s139_s27  ;;  %s40_s24 = int_to_ptr.vmem [resolvable:$true] %s39_s24 }
  0x15   :  { %p143_p9 = scmp.lt.u32.totalorder %s139_s27, %s247_s1 }
  0x17   :  { %p145_p10 = pnand %p143_p9, %p140_p8 }
  0x19   :  { %148 = shalt.err (!%p145_p10)
}
  0x1a   :  { %s149_s4 = scalar_lea.vmem %s40_s24, 256  ;;  %p154_p12 = scmp.lt.s32.totalorder %s40_s24, %s40_s24 }
  0x1b   :  { %p150_p11 = scmp.ne.s32.totalorder %s40_s24, %s149_s4  ;;  %p155_p13 = scmp.lt.s32.totalorder %s149_s4, %s149_s4 }
  0x1d   :  { %p156_p0 = por %p155_p13, %p154_p12 }
  0x1f   :  { %p157_p1 = pnand %p156_p0, %p150_p11 }
  0x21   :  { %160 = shalt.err (!%p157_p1)
}
  0x22   :  { %45 = dma.hbm_to_vmem [thread:$0]  %s247_s1, 256, %s40_s24, [#allocation6], %s190_s19, %s190_s19, %s191_s20  }
  0x23   :  { %183 = dma.done.wait [#allocation3], 256  }
  0x24   :  { %184 = vsyncadd [#allocation3], 4294967040 }
  0x25   :  { %185 = dma.done.wait [#allocation6], 256  }
  0x26   :  { %186 = vsyncadd [#allocation6], 4294967040  ;;  %v193_v0 = vmov 0.0   ;;  %v65_v1 = vld [vmem:[#allocation2] sm:$0xff]  ;;  %v66_v2 = vld [vmem:[#allocation2 + $0x8] sm:$0xff]  ;;  %s194_s1 = smov [#allocation7]  }
  0x27   :  { %64 = vst [vmem:[#allocation7] sm:$0x1] %v193_v0  ;;  %v69_v3 = vadd.f32 1e-06, %v65_v1  ;;  %v70_v4 = vadd.f32 1e-06, %v66_v2 }
  0x28   :  { %v67_v6 = vld [vmem:[#allocation5] sm:$0xff]  ;;  %v68_v8 = vld [vmem:[#allocation5 + $0x8] sm:$0xff]  ;;  %s93_s6 = sshll.u32 %s194_s1, 4  ;;  %s94_s6 = int_to_ptr.vmem [resolvable:$true] %s93_s6 }
  0x29   :  { %113 = vlog2.f32 %v69_v3  ;;  %s161_s7 = scalar_lea.vmem %s94_s6, 16  ;;  %s165_s8 = scalar_lea.vmem %s94_s6, 32 }
  0x2a   :  { %115 = vlog2.f32 %v70_v4  ;;  %p162_p2 = scmp.ne.s32.totalorder %s94_s6, %s161_s7  ;;  %p166_p3 = scmp.lt.s32.totalorder %s94_s6, %s94_s6 }
  0x2b   :  { %p167_p4 = scmp.lt.s32.totalorder %s165_s8, %s161_s7 }
  0x2d   :  { %p168_p5 = por %p167_p4, %p166_p3 }
  0x2e   :  { %v77_v19 = vld [vmem:[#allocation7] sm:$0x1] }
  0x2f   :  { %p169_p6 = pnand %p168_p5, %p162_p2 }
  0x33   :  { %v114_v5 = vpop.eup %113 }
  0x34   :  { %v116_v7 = vpop.eup %115  ;;  %v72_v9 = vmul.f32 0.6931472, %v114_v5 }
  0x35   :  { %v74_v10 = vmul.f32 0.6931472, %v116_v7 }
  0x36   :  { %v75_v11 = vmul.f32 %v72_v9, %v67_v6 }
  0x37   :  { %v76_v12 = vmul.f32 %v74_v10, %v68_v8 }
  0x39   :  { %v78_v13 = vadd.f32 %v76_v12, %v75_v11 }
  0x3b   :  { %v79_v14 = vrot.slane %v78_v13, 4 }
  0x3d   :  { %v80_v15 = vadd.f32 %v79_v14, %v78_v13 }
  0x3f   :  { %v81_v16 = vrot.slane %v80_v15, 2 }
  0x41   :  { %v82_v17 = vadd.f32 %v81_v16, %v80_v15 }
  0x43   :  { %v83_v18 = vrot.slane %v82_v17, 1 }
  0x45   :  { %v84_v20 = vadd.f32 %v83_v18, %v82_v17 }
  0x47   :  { %v85_v21 = vadd.f32 %v84_v20, %v77_v19 }
  0x49   :  { %86 = vst [vmem:[#allocation7] sm:$0x1] %v85_v21 }
  0x4a   :  { %172 = shalt.err (!%p169_p6)
}
  0x4b   :  { %s173_s11 = scalar_lea.hbm %s248_s2, 16 }
  0x4c   :  { %p174_p7 = scmp.ne.s32.totalorder %s248_s2, %s173_s11  ;;  %p177_p8 = scmp.lt.u32.totalorder %s173_s11, %s248_s2 }
  0x4e   :  { %p179_p9 = pnand %p177_p8, %p174_p7 }
  0x50   :  { %182 = shalt.err (!%p179_p9)
}
  0x51   :  { %96 = dma.vmem_to_hbm [thread:$0]  %s94_s6, 16, %s248_s2, [#allocation4]  }
  0x52   :  { %187 = dma.done.wait [#allocation4], 16  }
  0x53   :  { %188 = vsyncadd [#allocation4], 4294967280 }
  0x54   :  { %100 = vsyncpa [#allocation3], 1 }
  0x55   :  { %101 = vsyncpa [#allocation6], 1 }
  0x56   :  { %102 = vsyncpa [#allocation4], 1 }

</bundles_post_ra>
